<compile_context>
chip_gen: v7x
topology: tpu7x:2x2x1
jax: 0.10.0
libtpu: 0.0.40
codegen_flags: <defaults>
</compile_context>

<pallas_src>
import jax
import jax.numpy as jnp
from jax.experimental import pallas as pl
from jax.experimental.pallas import tpu as pltpu


def _softplus(x):
    # numerically stable softplus (same value as torch.nn.Softplus()); exp/log -> EUP
    return jnp.maximum(x, 0.0) + jnp.log(1.0 + jnp.exp(-jnp.abs(x)))


def _sigmoid(x):
    return 1.0 / (1.0 + jnp.exp(-x))


def monojoint_kernel(losses_ref, feats_ref, wfs_ref, bfs_ref, prior_ref,
                     lw_ref, lb_ref, out_ref):
    """MonoJoint forward, task-major (batch-on-lanes) layout.

    losses_ref : (T, B)  per-task, per-sample losses
    feats_ref  : (F, B)  features (transposed)
    wfs_ref    : (T, F)  feature_sel weight (torch (out, in) layout, used directly)
    bfs_ref    : (T, 1)  feature_sel bias
    prior_ref  : (T, 1)  task_prior
    lw_ref     : (T, 1)  loss_w
    lb_ref     : (T, 1)  loss_b
    out_ref    : (1, 1)  f32 scalar meta-loss in SMEM
    """
    losses = losses_ref[...].astype(jnp.float32)        # (T, B)  upcast in-kernel if bf16
    feats = feats_ref[...].astype(jnp.float32)          # (F, B)
    batch = losses.shape[1]

    # norm_loss1: per-task standardization over the batch (lane reduce).
    # torch.std defaults to the unbiased estimator (divide by B-1).
    mean = jnp.mean(losses, axis=1, keepdims=True)                              # (T, 1)
    centered = losses - mean
    var = jnp.sum(centered * centered, axis=1, keepdims=True) * (1.0 / (batch - 1))
    normed = centered / (jnp.sqrt(var) + 1e-6)                                  # (T, B)

    # feature_sel: Linear(feature_dim -> input_dim): (T,F) @ (F,B) + b -> (T,B)
    fmask = jnp.dot(wfs_ref[...], feats,
                    preferred_element_type=jnp.float32) + bfs_ref[...]

    # get_loss_weight + data mask (VPU elementwise, EUP transcendentals).
    label_mask = _sigmoid(normed * lw_ref[...] + lb_ref[...])
    data_mask = _softplus(fmask) * label_mask * _softplus(prior_ref[...])

    # (data_mask * losses).sum(1).mean()  ==  single full reduce / batch.
    out_ref[0, 0] = jnp.sum(data_mask * losses) * (1.0 / batch)


@jax.jit
def monojoint_forward(features, losses, w_fs, b_fs, task_prior, loss_w, loss_b):
    B, F = features.shape
    _, T = losses.shape
    # Layout plumbing only: put the batch axis on lanes (lane-dense for large B).
    losses_t = losses.T          # (T, B)
    feats_t = features.T         # (F, B)

    def full(shape):
        return pl.BlockSpec(shape, lambda: (0,) * len(shape))

    out = pl.pallas_call(
        monojoint_kernel,
        out_shape=jax.ShapeDtypeStruct((1, 1), jnp.float32),
        in_specs=[
            full((T, B)),   # losses_t
            full((F, B)),   # feats_t
            full((T, F)),   # feature_sel weight
            full((T, 1)),   # feature_sel bias
            full((T, 1)),   # task_prior
            full((T, 1)),   # loss_w
            full((T, 1)),   # loss_b
        ],
        out_specs=pl.BlockSpec(memory_space=pltpu.MemorySpace.SMEM),
    )(losses_t, feats_t, w_fs, b_fs, task_prior, loss_w, loss_b)
    return out[0, 0]


class MonoJointPallas:
    """Forward-only Pallas port of auxilearn MonoJoint."""

    def __init__(self, main_task, input_dim, feature_dim, hidden_sizes=1,
                 nonlinearity=None, bias=True, dropout_rate=0.0,
                 weight_normalization=True, K=2, init_lower=0.0, init_upper=1.0,
                 clamp_bias=False, seed=0):
        self.main_task = main_task
        self.input_dim = input_dim
        self.feature_dim = feature_dim
        self.clamp_bias = clamp_bias
        self.weight_normalization = weight_normalization
        # dropout / hidden_sizes / self.net are defined but unused by the
        # reference forward (net is an empty nn.Sequential), so they are omitted.
        T, F = input_dim, feature_dim
        k0, k1 = jax.random.split(jax.random.PRNGKey(seed))
        # Parameters cached once in f32, task-major (T, ...) layout.
        self.task_prior = jnp.ones((T, 1), jnp.float32)                        # ones(1, T)
        self.w_fs = jax.random.uniform(k0, (T, F), jnp.float32, -0.05, 0.05)   # _init_layer
        self.b_fs = jnp.zeros((T, 1), jnp.float32)
        self.loss_w = 0.05 * jax.random.uniform(k1, (T, 1), jnp.float32)       # 0.05*rand(1,T)
        self.loss_b = jnp.zeros((T, 1), jnp.float32)

    def forward(self, features, losses, to_train=True):
        # `to_train` only changes which tensors are detached in torch; the
        # forward value is identical for both branches.
        return monojoint_forward(features, losses, self.w_fs, self.b_fs,
                                 self.task_prior, self.loss_w, self.loss_b)

    __call__ = forward

    def get_weights(self):
        return [self.task_prior, self.w_fs, self.b_fs, self.loss_w, self.loss_b]

    def clamp(self):
        # Reference clamp() iterates self.net, which is empty -> no-op.
        pass


if __name__ == "__main__":
    B, T, F = 16, 8, 128     # batch, input_dim (num task losses), feature_dim
    key = jax.random.PRNGKey(0)
    kf, kl = jax.random.split(key)
    features = jax.random.normal(kf, (B, F), jnp.float32)
    losses = jax.random.uniform(kl, (B, T), jnp.float32, 0.1, 2.0)

    net = MonoJointPallas(main_task=0, input_dim=T, feature_dim=F)
    out = jax.block_until_ready(net.forward(features, losses))

    # Pure-JAX reference (natural (B, T) layout, mirrors the torch math).
    def reference(features, losses):
        m = jnp.mean(losses, axis=0, keepdims=True)
        std = jnp.std(losses, axis=0, ddof=1, keepdims=True)   # unbiased, torch default
        normed = (losses - m) / (std + 1e-6)
        fmask = features @ net.w_fs.T + net.b_fs[:, 0]
        lmask = jax.nn.sigmoid(normed * net.loss_w[:, 0] + net.loss_b[:, 0])
        dmask = jax.nn.softplus(fmask) * lmask * jax.nn.softplus(net.task_prior[:, 0])
        return jnp.mean(jnp.sum(dmask * losses, axis=1))

    ref = reference(features, losses)
    assert jnp.allclose(out, ref, rtol=1e-4, atol=1e-4), (out, ref)
    print("KERNEL_OK")
</pallas_src>

<mosaic_0001>
module attributes {stable_mosaic.version = 11 : i64} {
  func.func @monojoint_kernel(%arg0: memref<8x16xf32, #tpu.memory_space<vmem>>, %arg1: memref<128x16xf32, #tpu.memory_space<vmem>>, %arg2: memref<8x128xf32, #tpu.memory_space<vmem>>, %arg3: memref<8x1xf32, #tpu.memory_space<vmem>>, %arg4: memref<8x1xf32, #tpu.memory_space<vmem>>, %arg5: memref<8x1xf32, #tpu.memory_space<vmem>>, %arg6: memref<8x1xf32, #tpu.memory_space<vmem>>, %arg7: memref<1x1xf32, #tpu.memory_space<smem>>) attributes {dimension_semantics = [], scalar_prefetch = 0 : i64, scratch_operands = 0 : i64, tpu.core_type = #tpu.core_type<tc>} {
    %c0 = arith.constant 0 : index
    %c0_0 = arith.constant 0 : index
    %0 = vector.load %arg0[%c0, %c0_0] : memref<8x16xf32, #tpu.memory_space<vmem>>, vector<8x16xf32>
    %c0_1 = arith.constant 0 : index
    %c0_2 = arith.constant 0 : index
    %1 = vector.load %arg1[%c0_1, %c0_2] : memref<128x16xf32, #tpu.memory_space<vmem>>, vector<128x16xf32>
    %cst = arith.constant dense<0.000000e+00> : vector<8xf32>
    %2 = vector.multi_reduction <add>, %0, %cst [1] : vector<8x16xf32> to vector<8xf32>
    %3 = vector.shape_cast %2 : vector<8xf32> to vector<8x1xf32>
    %cst_3 = arith.constant 1.600000e+01 : f32
    %4 = vector.broadcast %cst_3 : f32 to vector<8x1xf32>
    %5 = arith.divf %3, %4 : vector<8x1xf32>
    %6 = vector.broadcast %5 : vector<8x1xf32> to vector<8x16xf32>
    %7 = arith.subf %0, %6 : vector<8x16xf32>
    %8 = arith.mulf %7, %7 : vector<8x16xf32>
    %cst_4 = arith.constant dense<0.000000e+00> : vector<8xf32>
    %9 = vector.multi_reduction <add>, %8, %cst_4 [1] : vector<8x16xf32> to vector<8xf32>
    %10 = vector.shape_cast %9 : vector<8xf32> to vector<8x1xf32>
    %cst_5 = arith.constant 0.0666666701 : f32
    %11 = vector.broadcast %cst_5 : f32 to vector<8x1xf32>
    %12 = arith.mulf %10, %11 : vector<8x1xf32>
    %13 = math.sqrt %12 : vector<8x1xf32>
    %cst_6 = arith.constant 9.99999997E-7 : f32
    %14 = vector.broadcast %cst_6 : f32 to vector<8x1xf32>
    %15 = arith.addf %13, %14 : vector<8x1xf32>
    %16 = vector.broadcast %15 : vector<8x1xf32> to vector<8x16xf32>
    %17 = arith.divf %7, %16 : vector<8x16xf32>
    %c0_7 = arith.constant 0 : index
    %c0_8 = arith.constant 0 : index
    %18 = vector.load %arg2[%c0_7, %c0_8] : memref<8x128xf32, #tpu.memory_space<vmem>>, vector<8x128xf32>
    %cst_9 = arith.constant dense<0.000000e+00> : vector<8x16xf32>
    %19 = tpu.matmul %18, %1, %cst_9 {dimension_numbers = #tpu.dot_dimension_numbers<[1], [0], [0], [1], [0, 0, 1, 1], [], []>} : vector<8x128xf32>, vector<128x16xf32>, vector<8x16xf32> -> vector<8x16xf32>
    %c0_10 = arith.constant 0 : index
    %c0_11 = arith.constant 0 : index
    %20 = vector.load %arg3[%c0_10, %c0_11] : memref<8x1xf32, #tpu.memory_space<vmem>>, vector<8x1xf32>
    %21 = vector.broadcast %20 : vector<8x1xf32> to vector<8x16xf32>
    %22 = arith.addf %19, %21 : vector<8x16xf32>
    %c0_12 = arith.constant 0 : index
    %c0_13 = arith.constant 0 : index
    %23 = vector.load %arg5[%c0_12, %c0_13] : memref<8x1xf32, #tpu.memory_space<vmem>>, vector<8x1xf32>
    %24 = vector.broadcast %23 : vector<8x1xf32> to vector<8x16xf32>
    %25 = arith.mulf %17, %24 : vector<8x16xf32>
    %c0_14 = arith.constant 0 : index
    %c0_15 = arith.constant 0 : index
    %26 = vector.load %arg6[%c0_14, %c0_15] : memref<8x1xf32, #tpu.memory_space<vmem>>, vector<8x1xf32>
    %27 = vector.broadcast %26 : vector<8x1xf32> to vector<8x16xf32>
    %28 = arith.addf %25, %27 : vector<8x16xf32>
    %cst_16 = arith.constant 0.000000e+00 : f32
    %29 = vector.broadcast %cst_16 : f32 to vector<8x16xf32>
    %30 = arith.subf %29, %28 : vector<8x16xf32>
    %31 = math.exp %30 : vector<8x16xf32>
    %cst_17 = arith.constant 1.000000e+00 : f32
    %32 = vector.broadcast %cst_17 : f32 to vector<8x16xf32>
    %33 = arith.addf %32, %31 : vector<8x16xf32>
    %cst_18 = arith.constant 1.000000e+00 : f32
    %34 = vector.broadcast %cst_18 : f32 to vector<8x16xf32>
    %35 = arith.divf %34, %33 : vector<8x16xf32>
    %cst_19 = arith.constant 0.000000e+00 : f32
    %36 = vector.broadcast %cst_19 : f32 to vector<8x16xf32>
    %37 = arith.maximumf %22, %36 : vector<8x16xf32>
    %38 = math.absf %22 : vector<8x16xf32>
    %cst_20 = arith.constant 0.000000e+00 : f32
    %39 = vector.broadcast %cst_20 : f32 to vector<8x16xf32>
    %40 = arith.subf %39, %38 : vector<8x16xf32>
    %41 = math.exp %40 : vector<8x16xf32>
    %cst_21 = arith.constant 1.000000e+00 : f32
    %42 = vector.broadcast %cst_21 : f32 to vector<8x16xf32>
    %43 = arith.addf %42, %41 : vector<8x16xf32>
    %44 = math.log %43 : vector<8x16xf32>
    %45 = arith.addf %37, %44 : vector<8x16xf32>
    %46 = arith.mulf %45, %35 : vector<8x16xf32>
    %c0_22 = arith.constant 0 : index
    %c0_23 = arith.constant 0 : index
    %47 = vector.load %arg4[%c0_22, %c0_23] : memref<8x1xf32, #tpu.memory_space<vmem>>, vector<8x1xf32>
    %cst_24 = arith.constant 0.000000e+00 : f32
    %48 = vector.broadcast %cst_24 : f32 to vector<8x1xf32>
    %49 = arith.maximumf %47, %48 : vector<8x1xf32>
    %50 = math.absf %47 : vector<8x1xf32>
    %cst_25 = arith.constant 0.000000e+00 : f32
    %51 = vector.broadcast %cst_25 : f32 to vector<8x1xf32>
    %52 = arith.subf %51, %50 : vector<8x1xf32>
    %53 = math.exp %52 : vector<8x1xf32>
    %cst_26 = arith.constant 1.000000e+00 : f32
    %54 = vector.broadcast %cst_26 : f32 to vector<8x1xf32>
    %55 = arith.addf %54, %53 : vector<8x1xf32>
    %56 = math.log %55 : vector<8x1xf32>
    %57 = arith.addf %49, %56 : vector<8x1xf32>
    %58 = vector.broadcast %57 : vector<8x1xf32> to vector<8x16xf32>
    %59 = arith.mulf %46, %58 : vector<8x16xf32>
    %60 = arith.mulf %59, %0 : vector<8x16xf32>
    %61 = vector.shape_cast %60 : vector<8x16xf32> to vector<1x8x16xf32>
    %cst_27 = arith.constant dense<0.000000e+00> : vector<1xf32>
    %62 = vector.multi_reduction <add>, %61, %cst_27 [1, 2] : vector<1x8x16xf32> to vector<1xf32>
    %63 = vector.shape_cast %62 : vector<1xf32> to vector<1x1x1xf32>
    %64 = vector.extract %63[0, 0, 0] : f32 from vector<1x1x1xf32>
    %cst_28 = arith.constant 6.250000e-02 : f32
    %65 = arith.mulf %64, %cst_28 : f32
    %c0_29 = arith.constant 0 : index
    %c0_30 = arith.constant 0 : index
    %66 = memref.load %arg7[%c0_29, %c0_30] : memref<1x1xf32, #tpu.memory_space<smem>>
    memref.store %65, %arg7[%c0_29, %c0_30] : memref<1x1xf32, #tpu.memory_space<smem>>
    return
  }
}

</mosaic_0001>

<bundles_post_ra>
// kernel: monojoint_forward.1
= control target key start
LH: loop header
LB: loop body
LE: loop exit
PB: predicated region body
PF: predicated region fallthrough
CT: control target
= control target key end

     0   :  { %vm44_vm0 = vcmask 130048   ;;  %v329_v4 = vmov 0.0|0.0   ;;  %vm330_vm1 = vmmov 0   ;;  %v331_v8 = vmov 0.0   ;;  %s460_s0 = inlined_call_operand.vmem [shape: f32[8,16], index: 0, kind: input, shape index: {}]   ;;  %s461_s1 = inlined_call_operand.vmem [shape: f32[128,16], index: 1, kind: input, shape index: {}]   ;;  %s462_s2 = inlined_call_operand.vmem [shape: f32[8,128], index: 2, kind: input, shape index: {}]   ;;  %s463_s3 = inlined_call_operand.vmem [shape: f32[8,1], index: 3, kind: input, shape index: {}]   ;;  %s464_s4 = inlined_call_operand.vmem [shape: f32[8,1], index: 4, kind: input, shape index: {}]   ;;  %s465_s5 = inlined_call_operand.vmem [shape: f32[8,1], index: 5, kind: input, shape index: {}]   ;;  %s466_s6 = inlined_call_operand.vmem [shape: f32[8,1], index: 6, kind: input, shape index: {}]   ;;  %s467_s7 = inlined_call_operand.hbm [shape: f32[1,1], index: 7, kind: output, shape index: {}]  }
   0x1   :  { %v377_v0 = vld [vmem:[%s460_s0] sm:$0xff]  ;;  %v29_v2 = vld [vmem:[%s461_s1 + $0x8] sm:$0xff]  ;;  %268 = vmatprep.subr.bf16.mxu0 %v329_v4  ;;  %v30_v6 = vld [vmem:[%s461_s1 + $0x10] sm:$0xff]  ;;  %265 = vmatprep.mubr.msk.f32.mxu0 %vm330_vm1, %v331_v8 }
   0x2   :  { %v28_v1 = vld [vmem:[%s461_s1] sm:$0xff]  ;;  %v45_v3 = vsel %vm44_vm0, %v377_v0, 0.0  ;;  %v31_v7 = vld [vmem:[%s461_s1 + $0x18] sm:$0xff]  ;;  %v33_v11 = vld [vmem:[%s461_s1 + $0x28] sm:$0xff] }
   0x3   :  { %v269_v5 = vpack.c.bf16 %v29_v2, %v28_v1  ;;  %46 = vadd.xlane.f32.xlu0 %v45_v3  ;;  %v272_v9 = vpack.c.bf16 %v31_v7, %v30_v6  ;;  %v32_v10 = vld [vmem:[%s461_s1 + $0x20] sm:$0xff] }
   0x5   :  { %270 = vmatpush3.bf16.msra.mxu0 %v269_v5 }
   0x6   :  { %271 = vmatprep.subr.bf16.mxu0 %v329_v4 }
   0x7   :  { %12 = vsyncpa [#allocation3], 0  ;;  %v275_v12 = vpack.c.bf16 %v33_v11, %v32_v10  ;;  %v34_v13 = vld [vmem:[%s461_s1 + $0x30] sm:$0xff]  ;;  %v35_v14 = vld [vmem:[%s461_s1 + $0x38] sm:$0xff]  ;;  %v332_v29 = vmov 0   ;;  %s317_s18 = scalar_lea.hbm %s467_s7, 16 }
   0x8   :  { %v278_v15 = vpack.c.bf16 %v35_v14, %v34_v13  ;;  %v36_v16 = vld [vmem:[%s461_s1 + $0x40] sm:$0xff]  ;;  %v37_v17 = vld [vmem:[%s461_s1 + $0x48] sm:$0xff]  ;;  %v38_v19 = vld [vmem:[%s461_s1 + $0x50] sm:$0xff]  ;;  %299 = vset.pattern.permute.xlu1 %v332_v29  ;;  %300 = vset.pattern.permute.xlu0 %v332_v29  ;;  %p318_p0 = scmp.ne.s32.totalorder %s467_s7, %s317_s18  ;;  %p321_p1 = scmp.lt.u32.totalorder %s317_s18, %s467_s7 }
   0x9   :  { %273 = vmatpush3.bf16.msra.mxu0 %v272_v9  ;;  %v281_v18 = vpack.c.bf16 %v37_v17, %v36_v16  ;;  %v39_v20 = vld [vmem:[%s461_s1 + $0x58] sm:$0xff]  ;;  %v40_v22 = vld [vmem:[%s461_s1 + $0x60] sm:$0xff]  ;;  %v41_v23 = vld [vmem:[%s461_s1 + $0x68] sm:$0xff] }
   0xa   :  { %274 = vmatprep.subr.bf16.mxu0 %v329_v4  ;;  %v284_v21 = vpack.c.bf16 %v39_v20, %v38_v19  ;;  %v287_v24 = vpack.c.bf16 %v41_v23, %v40_v22  ;;  %v67_v25 = vld [vmem:[%s463_s3] sm:$0xff]  ;;  %v42_v27 = vld [vmem:[%s461_s1 + $0x70] sm:$0xff]  ;;  %v43_v28 = vld [vmem:[%s461_s1 + $0x78] sm:$0xff]  ;;  %p323_p2 = pnand %p321_p1, %p318_p0 }
   0xb   :  { %v173_v26 = vld [vmem:[%s464_s4] sm:$0xff]  ;;  %70 = vperm.xlu1 %299, %v67_v25   ;;  %v290_v33 = vpack.c.bf16 %v43_v28, %v42_v27 }
   0xc   :  { %v175_v30 = vand.u32 2147483647, %v173_v26  ;;  %v143_v31 = vld [vmem:[%s465_s5] sm:$0xff]  ;;  %v174_v38 = vmax.f32 %v173_v26, 0.0 }
   0xd   :  { %276 = vmatpush3.bf16.msra.mxu0 %v275_v12  ;;  %v66_v35 = vld [vmem:[%s462_s2] sm:$0xff] }
   0xe   :  { %277 = vmatprep.subr.bf16.mxu0 %v329_v4  ;;  %v176_v32 = vsub.f32 0.0, %v175_v30  ;;  %v150_v47 = vld [vmem:[%s466_s6] sm:$0xff] }
   0xf   :  { %146 = vperm.xlu1 %299, %v143_v31  }
  0x10   :  { %v177_v34 = vmul.f32 1.442695, %v176_v32 }
  0x11   :  { %279 = vmatpush3.bf16.msra.mxu0 %v278_v15 }
  0x12   :  { %280 = vmatprep.subr.bf16.mxu0 %v329_v4  ;;  %301 = vpow2.f32 %v177_v34 }
  0x15   :  { %282 = vmatpush3.bf16.msra.mxu0 %v281_v18 }
  0x16   :  { %283 = vmatprep.subr.bf16.mxu0 %v329_v4 }
  0x19   :  { %285 = vmatpush3.bf16.msra.mxu0 %v284_v21 }
  0x1a   :  { %286 = vmatprep.subr.bf16.mxu0 %v329_v4 }
  0x1c   :  { %v302_v36 = vpop.eup %301 }
  0x1d   :  { %288 = vmatpush3.bf16.msra.mxu0 %v287_v24  ;;  %v179_v37 = vadd.f32 1.0, %v302_v36 }
  0x1e   :  { %289 = vmatprep.subr.bf16.mxu0 %v329_v4 }
  0x1f   :  { %303 = vlog2.f32 %v179_v37 }
  0x21   :  { %291 = vmatpush3.bf16.msra.mxu0 %v290_v33 }
  0x24   :  { %266 = vmatmul.mubr.f32.vlgmr.msra.gmra.mrb[0].mxu0 %v66_v35 }
  0x29   :  { %v304_v39 = vpop.eup %303 }
  0x2a   :  { %v181_v40 = vmul.f32 0.6931472, %v304_v39 }
  0x2c   :  { %v182_v41 = vadd.f32 %v181_v40, %v174_v38 }
  0x2e   :  { %185 = vperm.xlu1 %299, %v182_v41  }
  0x8a   :  { %v71_v52 = vpop.permute.xlu1 %70 }
  0x8e   :  { %v147_v2 = vpop.permute.xlu1 %146 }
  0x90   :  { %v47_v42 = vpop.xlane.xlu0 %46 }
  0x91   :  { %v49_v43 = vmul.f32 0.0625, %v47_v42 }
  0x93   :  { %v50_v44 = vsub.f32 %v377_v0, %v49_v43 }
  0x95   :  { %v51_v45 = vmul.f32 %v50_v44, %v50_v44 }
  0x97   :  { %v52_v46 = vsel %vm44_vm0, %v51_v45, 0.0 }
  0x98   :  { %53 = vadd.xlane.f32.xlu0 %v52_v46 }
  0xad   :  { %v186_v18 = vpop.permute.xlu1 %185 }
  0xae   :  { %153 = vperm.xlu0 %300, %v150_v47  }
  0xf7   :  { %v139_v48 = vpop.f32.mrb[0].mxu0 }
  0xf8   :  { %v267_v49 = vpop.f32.mrb[1].mxu0  ;;  %v140_v54 = vadd.f32 %v139_v48, %v71_v52 }
  0xfa   :  { %v164_v58 = vand.u32 2147483647, %v140_v54  ;;  %v163_v13 = vmax.f32 %v140_v54, 0.0 }
  0xfc   :  { %v165_v61 = vsub.f32 0.0, %v164_v58 }
  0xfe   :  { %v166_v62 = vmul.f32 1.442695, %v165_v61 }
 0x125   :  { %v54_v50 = vpop.xlane.xlu0 %53 }
 0x126   :  { %v55_v51 = vmul.f32 0.06666667, %v54_v50 }
 0x128   :  { %305 = vrsqrt.f32 %v55_v51  ;;  %vm58_vm2 = vcmp.eq.f32.partialorder %v55_v51, inf  ;;  %v61_v56 = vand.u32 2147483648, %v55_v51  ;;  %vm60_vm3 = vcmp.eq.f32.partialorder %v55_v51, 0.0 }
 0x12d   :  { %v154_v3 = vpop.permute.xlu0 %153 }
 0x132   :  { %v306_v53 = vpop.eup %305 }
 0x133   :  { %v57_v55 = vmul.f32 %v306_v53, %v55_v51 }
 0x135   :  { %v59_v57 = vsel %vm58_vm2, %v55_v51, %v57_v55 }
 0x136   :  { %v62_v59 = vsel %vm60_vm3, %v61_v56, %v59_v57 }
 0x137   :  { %v63_v60 = vadd.f32 1e-06, %v62_v59 }
 0x139   :  { %307 = vrcp.f32 %v63_v60 }
 0x13a   :  { %309 = vpow2.f32 %v166_v62 }
 0x143   :  { %v308_v63 = vpop.eup %307 }
 0x144   :  { %v65_v1 = vmul.f32 %v308_v63, %v50_v44  ;;  %v310_v7 = vpop.eup %309 }
 0x145   :  { %v168_v9 = vadd.f32 1.0, %v310_v7 }
 0x146   :  { %v149_v4 = vmul.f32 %v147_v2, %v65_v1 }
 0x148   :  { %v156_v5 = vadd.f32 %v154_v3, %v149_v4 }
 0x14a   :  { %v157_v6 = vsub.f32 0.0, %v156_v5 }
 0x14c   :  { %v158_v8 = vmul.f32 1.442695, %v157_v6 }
 0x14e   :  { %311 = vpow2.f32 %v158_v8 }
 0x14f   :  { %313 = vlog2.f32 %v168_v9 }
 0x158   :  { %v312_v10 = vpop.eup %311 }
 0x159   :  { %v160_v11 = vadd.f32 1.0, %v312_v10  ;;  %v314_v12 = vpop.eup %313 }
 0x15a   :  { %v170_v14 = vmul.f32 0.6931472, %v314_v12 }
 0x15b   :  { %315 = vrcp.f32 %v160_v11 }
 0x15c   :  { %v171_v15 = vadd.f32 %v170_v14, %v163_v13 }
 0x165   :  { %v316_v16 = vpop.eup %315 }
 0x166   :  { %v172_v17 = vmul.f32 %v316_v16, %v171_v15 }
 0x168   :  { %v188_v19 = vmul.f32 %v186_v18, %v172_v17 }
 0x16a   :  { %v189_v20 = vmul.f32 %v188_v19, %v377_v0 }
 0x16c   :  { %v190_v21 = vsel %vm44_vm0, %v189_v20, 0.0 }
 0x16d   :  { %191 = vadd.xlane.f32.xlu1 %v190_v21 }
 0x1fa   :  { %v192_v22 = vpop.xlane.xlu1 %191 }
 0x1fb   :  { %v193_v23 = vrot.slane %v192_v22, 4 }
 0x1fd   :  { %v194_v24 = vadd.f32 %v193_v23, %v192_v22 }
 0x1ff   :  { %v195_v25 = vrot.slane %v194_v24, 2 }
 0x201   :  { %v196_v26 = vadd.f32 %v195_v25, %v194_v24 }
 0x203   :  { %v197_v27 = vrot.slane %v196_v26, 1 }
 0x205   :  { %v198_v28 = vadd.f32 %v197_v27, %v196_v26 }
 0x207   :  { %292 = vpush %v198_v28 }
 0x238   :  { %s293_s2 = spop %292 }
 0x239   :  { %s200_s6 = smul.f32 0.0625, %s293_s2 }
 0x23b   :  { %202 = sst [smem:[#allocation2]] %s200_s6 }
 0x23c   :  { %326 = shalt.err (!%p323_p2)
}
 0x23d   :  { %s333_s23 = smov [#allocation2]  }
 0x23e   :  { %210 = dma.smem_to_hbm %s333_s23, 16, %s467_s7, [#allocation3]  }
 0x23f   :  { %327 = dma.done.wait [#allocation3], 16  }
 0x240   :  { %328 = vsyncadd [#allocation3], 4294967280 }
 0x241   :  { %214 = sfence }
 0x242   :  { %215 = vsyncpa [#allocation3], 1 }

</bundles_post_ra>
